<compile_context>
chip_gen: v5e
topology: v5e:2x2
jax: 0.10.0
libtpu: 0.0.40
codegen_flags: <defaults>
</compile_context>

<pallas_src>
import functools

import jax
import jax.numpy as jnp
from jax.experimental import pallas as pl
from jax.experimental.pallas import tpu as pltpu


def _transr_hinge_kernel(prel_ref, nrel_ref,          # scalar-prefetch (SMEM)
                         pd_ref, pr_ref, pMt_ref,     # positive triple blocks
                         nd_ref, nr_ref, nMt_ref,     # negative triple blocks
                         hinge_ref,                   # (1, 1, 1) output block
                         *, margin, p_norm):
    """One grid step == one (pos, neg) triple pair.

    pd/nd : (1, 1, De)   head - tail difference (M@(h-t) == M@h - M@t)
    pr/nr : (1, 1, Dr)   relation embedding
    pMt/nMt: (1, De, Dr) transposed transfer-matrix row for this triple's
             relation, gathered directly from the parameter table via the
             scalar-prefetched relation index (no HBM-materialized gather).
    hinge : (1, 1, 1)    per-triple margin-ranking hinge; mean taken in JAX.
    """
    del prel_ref, nrel_ref  # only used by the index_maps

    def score(d_ref, r_ref, Mt_ref):
        d = d_ref[0].astype(jnp.float32)                            # (1, De)
        Mt = Mt_ref[0].astype(jnp.float32)                          # (De, Dr)
        proj = jnp.dot(d, Mt, preferred_element_type=jnp.float32)   # (1, Dr)
        s = proj + r_ref[0].astype(jnp.float32)                     # (1, Dr)
        if p_norm == 1:
            return jnp.sum(jnp.abs(s), axis=-1, keepdims=True)      # (1, 1)
        return jnp.sqrt(jnp.sum(s * s, axis=-1, keepdims=True))     # (1, 1)

    pos = score(pd_ref, pr_ref, pMt_ref)
    neg = score(nd_ref, nr_ref, nMt_ref)

    # MarginRankingLoss with target = -1: max(0, pos - neg + margin)
    hinge = jnp.maximum(pos - neg + margin, 0.0)                    # (1, 1)
    hinge_ref[...] = hinge.reshape(1, 1, 1)


def transr_loss_pallas(pd, pr, prel, nd, nr, nrel, Mt, *, margin=1.0, p_norm=1):
    """pd/nd: (B, De) head-tail diffs; pr/nr: (B, Dr); prel/nrel: (B,) int32
    relation ids; Mt: (R, De, Dr) transposed transfer-matrix table."""
    B, De = pd.shape
    Dr = pr.shape[1]

    # 3-D views so every block's last two dims equal the full array dims.
    pd3 = pd.reshape(B, 1, De)
    nd3 = nd.reshape(B, 1, De)
    pr3 = pr.reshape(B, 1, Dr)
    nr3 = nr.reshape(B, 1, Dr)

    kernel = functools.partial(_transr_hinge_kernel, margin=margin, p_norm=p_norm)

    row_map = lambda i, prel_ref, nrel_ref: (i, 0, 0)
    pmat_map = lambda i, prel_ref, nrel_ref: (prel_ref[i], 0, 0)
    nmat_map = lambda i, prel_ref, nrel_ref: (nrel_ref[i], 0, 0)

    grid_spec = pltpu.PrefetchScalarGridSpec(
        num_scalar_prefetch=2,
        grid=(B,),
        in_specs=[
            pl.BlockSpec((1, 1, De), row_map),    # pd
            pl.BlockSpec((1, 1, Dr), row_map),    # pr
            pl.BlockSpec((1, De, Dr), pmat_map),  # Mt row for pos relation
            pl.BlockSpec((1, 1, De), row_map),    # nd
            pl.BlockSpec((1, 1, Dr), row_map),    # nr
            pl.BlockSpec((1, De, Dr), nmat_map),  # Mt row for neg relation
        ],
        out_specs=pl.BlockSpec((1, 1, 1), row_map),
    )

    hinges = pl.pallas_call(
        kernel,
        out_shape=jax.ShapeDtypeStruct((B, 1, 1), jnp.float32),
        grid_spec=grid_spec,
        compiler_params=pltpu.CompilerParams(
            dimension_semantics=("parallel",),   # independent per-triple outputs
        ),
    )(prel, nrel, pd3, pr3, Mt, nd3, nr3, Mt)

    # reduction='mean' of the margin-ranking loss.
    return jnp.mean(hinges)


def xavier_uniform(key, shape, dtype=jnp.float32):
    # PyTorch xavier_uniform_ for a 2D (fan_out, fan_in) weight.
    fan_out, fan_in = shape
    limit = (6.0 / (fan_in + fan_out)) ** 0.5
    return jax.random.uniform(key, shape, dtype=dtype, minval=-limit, maxval=limit)


class TransRParams:
    def __init__(self, key, num_entities, num_relations, dim_entity, dim_relation):
        k1, k2, k3 = jax.random.split(key, 3)
        self.dim_entity = dim_entity
        self.dim_relation = dim_relation
        self.entity_embeddings = xavier_uniform(k1, (num_entities, dim_entity))
        self.relation_embeddings = xavier_uniform(k2, (num_relations, dim_relation))
        self.transfer_matrix = xavier_uniform(
            k3, (num_relations, dim_relation * dim_entity))


def transr_forward(params: TransRParams, pos_triples, neg_triples,
                   *, margin=1.0, p_norm=1):
    """Mirrors TransRModel.forward(pos_triples, neg_triples)."""
    De, Dr = params.dim_entity, params.dim_relation
    R = params.transfer_matrix.shape[0]

    # Transposed transfer-matrix table (R, De, Dr): done once on the small
    # parameter table so the per-triple projection in-kernel is a plain
    # (1, De) @ (De, Dr) dot.
    Mt = params.transfer_matrix.reshape(R, Dr, De).transpose(0, 2, 1)

    def gather(triples):
        h = params.entity_embeddings[triples[:, 0]]            # (B, De)
        r = params.relation_embeddings[triples[:, 1]]          # (B, Dr)
        t = params.entity_embeddings[triples[:, 2]]            # (B, De)
        rel_idx = triples[:, 1].astype(jnp.int32)              # (B,)
        # Linearity of the projection: M @ h - M @ t == M @ (h - t).
        return (h - t), r, rel_idx

    pd, pr, prel = gather(pos_triples)
    nd, nr, nrel = gather(neg_triples)
    return transr_loss_pallas(pd, pr, prel, nd, nr, nrel, Mt,
                              margin=margin, p_norm=p_norm)


if __name__ == "__main__":
    key = jax.random.PRNGKey(0)
    k_params, k_pos, k_neg = jax.random.split(key, 3)

    num_entities = 16
    num_relations = 4
    dim_entity = 32
    dim_relation = 32
    batch = 8

    params = TransRParams(k_params, num_entities, num_relations,
                          dim_entity, dim_relation)

    # triples: (B, 3) = (head_idx, relation_idx, tail_idx)
    ph_idx = jax.random.randint(k_pos, (batch,), 0, num_entities)
    pr_idx = jax.random.randint(jax.random.fold_in(k_pos, 1), (batch,), 0, num_relations)
    pt_idx = jax.random.randint(jax.random.fold_in(k_pos, 2), (batch,), 0, num_entities)
    pos_triples = jnp.stack([ph_idx, pr_idx, pt_idx], axis=1).astype(jnp.int32)

    nh_idx = jax.random.randint(k_neg, (batch,), 0, num_entities)
    nr_idx = pr_idx  # negative samples typically keep the relation
    nt_idx = jax.random.randint(jax.random.fold_in(k_neg, 2), (batch,), 0, num_entities)
    neg_triples = jnp.stack([nh_idx, nr_idx, nt_idx], axis=1).astype(jnp.int32)

    loss = transr_forward(params, pos_triples, neg_triples, margin=1.0, p_norm=1)
    loss = jax.block_until_ready(loss)

    # Pure-JAX reference (same math as the PyTorch module, no Pallas).
    def ref_loss():
        def score(triples):
            h = params.entity_embeddings[triples[:, 0]]
            r = params.relation_embeddings[triples[:, 1]]
            t = params.entity_embeddings[triples[:, 2]]
            M = params.transfer_matrix[triples[:, 1]].reshape(
                -1, dim_relation, dim_entity)
            hp = jnp.einsum('bre,be->br', M, h)
            tp = jnp.einsum('bre,be->br', M, t)
            return jnp.sum(jnp.abs(hp + r - tp), axis=1)
        pos, neg = score(pos_triples), score(neg_triples)
        return jnp.mean(jnp.maximum(pos - neg + 1.0, 0.0))

    ref = jax.block_until_ready(ref_loss())
    assert jnp.allclose(loss, ref, rtol=1e-5, atol=1e-5), (loss, ref)
    print("KERNEL_OK")
</pallas_src>

<mosaic_0001>
module attributes {stable_mosaic.version = 11 : i64} {
  func.func @_transr_hinge_kernel(%arg0: i32, %arg1: memref<8xi32, #tpu.memory_space<smem>>, %arg2: memref<8xi32, #tpu.memory_space<smem>>, %arg3: memref<1x1x32xf32, #tpu.memory_space<vmem>>, %arg4: memref<1x1x32xf32, #tpu.memory_space<vmem>>, %arg5: memref<1x32x32xf32, #tpu.memory_space<vmem>>, %arg6: memref<1x1x32xf32, #tpu.memory_space<vmem>>, %arg7: memref<1x1x32xf32, #tpu.memory_space<vmem>>, %arg8: memref<1x32x32xf32, #tpu.memory_space<vmem>>, %arg9: memref<1x1x1xf32, #tpu.memory_space<vmem>>) attributes {dimension_semantics = [#tpu.dimension_semantics<parallel>], iteration_bounds = array<i64: 8>, scalar_prefetch = 2 : i64, scratch_operands = 0 : i64, tpu.core_type = #tpu.core_type<tc>, window_params = [{transform_indices = @transform_0, window_bounds = array<i64: 1, 1, 32>}, {transform_indices = @transform_1, window_bounds = array<i64: 1, 1, 32>}, {transform_indices = @transform_2, window_bounds = array<i64: 1, 32, 32>}, {transform_indices = @transform_3, window_bounds = array<i64: 1, 1, 32>}, {transform_indices = @transform_4, window_bounds = array<i64: 1, 1, 32>}, {transform_indices = @transform_5, window_bounds = array<i64: 1, 32, 32>}, {transform_indices = @transform_6, window_bounds = array<i64: 1, 1, 1>}]} {
    %c0 = arith.constant 0 : index
    %c0_0 = arith.constant 0 : index
    %c0_1 = arith.constant 0 : index
    %0 = vector.load %arg3[%c0, %c0_0, %c0_1] : memref<1x1x32xf32, #tpu.memory_space<vmem>>, vector<1x1x32xf32>
    %1 = vector.shape_cast %0 : vector<1x1x32xf32> to vector<1x32xf32>
    %c0_2 = arith.constant 0 : index
    %c0_3 = arith.constant 0 : index
    %c0_4 = arith.constant 0 : index
    %2 = vector.load %arg5[%c0_2, %c0_3, %c0_4] : memref<1x32x32xf32, #tpu.memory_space<vmem>>, vector<1x32x32xf32>
    %3 = vector.shape_cast %2 : vector<1x32x32xf32> to vector<32x32xf32>
    %cst = arith.constant dense<0.000000e+00> : vector<1x32xf32>
    %4 = tpu.matmul %1, %3, %cst {dimension_numbers = #tpu.dot_dimension_numbers<[1], [0], [0], [1], [0, 0, 1, 1], [], []>} : vector<1x32xf32>, vector<32x32xf32>, vector<1x32xf32> -> vector<1x32xf32>
    %c0_5 = arith.constant 0 : index
    %c0_6 = arith.constant 0 : index
    %c0_7 = arith.constant 0 : index
    %5 = vector.load %arg4[%c0_5, %c0_6, %c0_7] : memref<1x1x32xf32, #tpu.memory_space<vmem>>, vector<1x1x32xf32>
    %6 = vector.shape_cast %5 : vector<1x1x32xf32> to vector<1x32xf32>
    %7 = arith.addf %4, %6 : vector<1x32xf32>
    %8 = math.absf %7 : vector<1x32xf32>
    %cst_8 = arith.constant dense<0.000000e+00> : vector<1xf32>
    %9 = vector.multi_reduction <add>, %8, %cst_8 [1] : vector<1x32xf32> to vector<1xf32>
    %10 = vector.shape_cast %9 : vector<1xf32> to vector<1x1xf32>
    %c0_9 = arith.constant 0 : index
    %c0_10 = arith.constant 0 : index
    %c0_11 = arith.constant 0 : index
    %11 = vector.load %arg6[%c0_9, %c0_10, %c0_11] : memref<1x1x32xf32, #tpu.memory_space<vmem>>, vector<1x1x32xf32>
    %12 = vector.shape_cast %11 : vector<1x1x32xf32> to vector<1x32xf32>
    %c0_12 = arith.constant 0 : index
    %c0_13 = arith.constant 0 : index
    %c0_14 = arith.constant 0 : index
    %13 = vector.load %arg8[%c0_12, %c0_13, %c0_14] : memref<1x32x32xf32, #tpu.memory_space<vmem>>, vector<1x32x32xf32>
    %14 = vector.shape_cast %13 : vector<1x32x32xf32> to vector<32x32xf32>
    %cst_15 = arith.constant dense<0.000000e+00> : vector<1x32xf32>
    %15 = tpu.matmul %12, %14, %cst_15 {dimension_numbers = #tpu.dot_dimension_numbers<[1], [0], [0], [1], [0, 0, 1, 1], [], []>} : vector<1x32xf32>, vector<32x32xf32>, vector<1x32xf32> -> vector<1x32xf32>
    %c0_16 = arith.constant 0 : index
    %c0_17 = arith.constant 0 : index
    %c0_18 = arith.constant 0 : index
    %16 = vector.load %arg7[%c0_16, %c0_17, %c0_18] : memref<1x1x32xf32, #tpu.memory_space<vmem>>, vector<1x1x32xf32>
    %17 = vector.shape_cast %16 : vector<1x1x32xf32> to vector<1x32xf32>
    %18 = arith.addf %15, %17 : vector<1x32xf32>
    %19 = math.absf %18 : vector<1x32xf32>
    %cst_19 = arith.constant dense<0.000000e+00> : vector<1xf32>
    %20 = vector.multi_reduction <add>, %19, %cst_19 [1] : vector<1x32xf32> to vector<1xf32>
    %21 = vector.shape_cast %20 : vector<1xf32> to vector<1x1xf32>
    %22 = arith.subf %10, %21 : vector<1x1xf32>
    %cst_20 = arith.constant 1.000000e+00 : f32
    %23 = vector.broadcast %cst_20 : f32 to vector<1x1xf32>
    %24 = arith.addf %22, %23 : vector<1x1xf32>
    %cst_21 = arith.constant 0.000000e+00 : f32
    %25 = vector.broadcast %cst_21 : f32 to vector<1x1xf32>
    %26 = arith.maximumf %24, %25 : vector<1x1xf32>
    %27 = vector.shape_cast %26 : vector<1x1xf32> to vector<1x1x1xf32>
    %c0_22 = arith.constant 0 : index
    %c0_23 = arith.constant 0 : index
    %c0_24 = arith.constant 0 : index
    %28 = vector.load %arg9[%c0_22, %c0_23, %c0_24] : memref<1x1x1xf32, #tpu.memory_space<vmem>>, vector<1x1x1xf32>
    tpu.vector_store %arg9[%c0_22, %c0_23, %c0_24], %27 {strides = array<i32>} : memref<1x1x1xf32, #tpu.memory_space<vmem>>, vector<1x1x1xf32>,
    return
  }
  func.func @transform_0(%arg0: i32, %arg1: memref<8xi32, #tpu.memory_space<smem>>, %arg2: memref<8xi32, #tpu.memory_space<smem>>) -> (i32, i32, i32) {
    %c0_i32 = arith.constant 0 : i32
    %c0_i32_0 = arith.constant 0 : i32
    %c0_i32_1 = arith.constant 0 : i32
    return %arg0, %c0_i32, %c0_i32_0 : i32, i32, i32
  }
  func.func @transform_1(%arg0: i32, %arg1: memref<8xi32, #tpu.memory_space<smem>>, %arg2: memref<8xi32, #tpu.memory_space<smem>>) -> (i32, i32, i32) {
    %c0_i32 = arith.constant 0 : i32
    %c0_i32_0 = arith.constant 0 : i32
    %c0_i32_1 = arith.constant 0 : i32
    return %arg0, %c0_i32, %c0_i32_0 : i32, i32, i32
  }
  func.func @transform_2(%arg0: i32, %arg1: memref<8xi32, #tpu.memory_space<smem>>, %arg2: memref<8xi32, #tpu.memory_space<smem>>) -> (i32, i32, i32) {
    %0 = arith.index_cast %arg0 : i32 to index
    %1 = memref.load %arg1[%0] : memref<8xi32, #tpu.memory_space<smem>>
    %c0_i32 = arith.constant 0 : i32
    %c0_i32_0 = arith.constant 0 : i32
    %c0_i32_1 = arith.constant 0 : i32
    return %1, %c0_i32, %c0_i32_0 : i32, i32, i32
  }
  func.func @transform_3(%arg0: i32, %arg1: memref<8xi32, #tpu.memory_space<smem>>, %arg2: memref<8xi32, #tpu.memory_space<smem>>) -> (i32, i32, i32) {
    %c0_i32 = arith.constant 0 : i32
    %c0_i32_0 = arith.constant 0 : i32
    %c0_i32_1 = arith.constant 0 : i32
    return %arg0, %c0_i32, %c0_i32_0 : i32, i32, i32
  }
  func.func @transform_4(%arg0: i32, %arg1: memref<8xi32, #tpu.memory_space<smem>>, %arg2: memref<8xi32, #tpu.memory_space<smem>>) -> (i32, i32, i32) {
    %c0_i32 = arith.constant 0 : i32
    %c0_i32_0 = arith.constant 0 : i32
    %c0_i32_1 = arith.constant 0 : i32
    return %arg0, %c0_i32, %c0_i32_0 : i32, i32, i32
  }
  func.func @transform_5(%arg0: i32, %arg1: memref<8xi32, #tpu.memory_space<smem>>, %arg2: memref<8xi32, #tpu.memory_space<smem>>) -> (i32, i32, i32) {
    %0 = arith.index_cast %arg0 : i32 to index
    %1 = memref.load %arg2[%0] : memref<8xi32, #tpu.memory_space<smem>>
    %c0_i32 = arith.constant 0 : i32
    %c0_i32_0 = arith.constant 0 : i32
    %c0_i32_1 = arith.constant 0 : i32
    return %1, %c0_i32, %c0_i32_0 : i32, i32, i32
  }
  func.func @transform_6(%arg0: i32, %arg1: memref<8xi32, #tpu.memory_space<smem>>, %arg2: memref<8xi32, #tpu.memory_space<smem>>) -> (i32, i32, i32) {
    %c0_i32 = arith.constant 0 : i32
    %c0_i32_0 = arith.constant 0 : i32
    %c0_i32_1 = arith.constant 0 : i32
    return %arg0, %c0_i32, %c0_i32_0 : i32, i32, i32
  }
}

</mosaic_0001>

<bundles_post_ra>
// kernel: tpu_custom_call.1
= control target key start
LH: loop header
LB: loop body
LE: loop exit
PB: predicated region body
PF: predicated region fallthrough
CT: control target
= control target key end

     0   :  { %s1142_s11 = smov [#allocation3]   ;;  %s1143_s12 = smov [#allocation4]   ;;  %s1552_s0 = inlined_call_operand.hbm [shape: s32[8], index: 0, kind: input, shape index: {}]   ;;  %s1553_s2 = inlined_call_operand.hbm [shape: f32[8,1,32], index: 2, kind: input, shape index: {}]   ;;  %s1554_s3 = inlined_call_operand.hbm [shape: f32[8,1,32], index: 3, kind: input, shape index: {}]   ;;  %s1555_s4 = inlined_call_operand.hbm [shape: f32[4,32,32], index: 4, kind: input, shape index: {}]   ;;  %s1556_s5 = inlined_call_operand.hbm [shape: f32[8,1,32], index: 5, kind: input, shape index: {}]   ;;  %s1557_s6 = inlined_call_operand.hbm [shape: f32[8,1,32], index: 6, kind: input, shape index: {}]   ;;  %s1558_s7 = inlined_call_operand.hbm [shape: f32[4,32,32], index: 7, kind: input, shape index: {}]   ;;  %s1559_s8 = inlined_call_operand.vmem [shape: f32[8,1,1], index: 8, kind: output, shape index: {}]   ;;  %s1560_s1 = inlined_call_operand.hbm [shape: s32[8], index: 1, kind: input, shape index: {}]  }
   0x1   :  { %1571 = sst [smem:[#allocation32_spill]] %s1553_s2  ;;  %s14_s29 = sshll.u32 %s1552_s0, 4  ;;  %s15_s29 = int_to_ptr.hbm [resolvable:$true] %s14_s29 }
   0x2   :  { %1572 = sst [smem:[#allocation33_spill]] %s1554_s3  ;;  %s19_s10 = sshll.u32 %s1560_s1, 4  ;;  %s20_s10 = int_to_ptr.hbm [resolvable:$true] %s19_s10 }
   0x3   :  { %1573 = sst [smem:[#allocation34_spill]] %s1556_s5 }
   0x4   :  { %1574 = sst [smem:[#allocation35_spill]] %s1559_s8 }
   0x5   :  { %17 = dma.hbm_to_smem %s15_s29, 16, %s1142_s11, [#allocation2] }
   0x6   :  { %22 = dma.hbm_to_smem %s20_s10, 16, %s1143_s12, [#allocation2] }
   0x7   :  { %1080 = dma.done.wait [#allocation2], 32 }
   0x8   :  { %1081 = vsyncadd [#allocation2], 4294967264 }
   0x9   :  { %25 = sfence }
   0xa   :  { %26 = vsyncpa [#allocation6], 0 }
   0xb   :  { %28 = vsyncpa [#allocation6 + $0x1], 0 }
   0xc   :  { %29 = vsyncpa [#allocation8], 0 }
   0xd   :  { %31 = vsyncpa [#allocation8 + $0x1], 0 }
   0xe   :  { %32 = vsyncpa [#allocation11], 0 }
   0xf   :  { %34 = vsyncpa [#allocation11 + $0x1], 0 }
  0x10   :  { %35 = vsyncpa [#allocation14], 0 }
  0x11   :  { %37 = vsyncpa [#allocation14 + $0x1], 0  ;;  %s1197_s0 = smov 0   ;;  %s1199_s1 = smov 0  }
  0x12   :  { %s1201_s13 = smov 0   ;;  %s1203_s14 = smov 0  }
  0x13   :  { %s1205_s15 = smov 0   ;;  %s1207_s16 = smov 0  }
  0x14   :  { %s1209_s17 = smov 0   ;;  %s1211_s18 = smov 0  }
  0x15   :  { %s1213_s19 = smov 0   ;;  %s1215_s20 = smov 0  }
  0x16 LB: > { %1575 = sst [smem:[#allocation25_spill]] %s1132_s18  ;;  %s1246_s21 = sadd.s32 4294967295, %s1140_s20   ;;  %s1140_s20 = sphi %s1215_s20, %s1603_s20   ;;  %s1136_s19 = sphi %s1213_s19, %s1606_s19   ;;  %s1132_s18 = sphi %s1211_s18, %s1605_s18   ;;  %s1128_s17 = sphi %s1209_s17, %s1604_s17   ;;  %s1124_s16 = sphi %s1207_s16, %s1612_s16   ;;  %s1120_s15 = sphi %s1205_s15, %s1611_s15   ;;  %s1116_s14 = sphi %s1203_s14, %s1610_s14   ;;  %s1112_s13 = sphi %s1201_s13, %s1609_s13   ;;  %s1108_s1 = sphi %s1199_s1, %s1608_s1   ;;  %s1104_s0 = sphi %s1197_s0, %s1607_s0  }
  0x17   : > { %1576 = sst [smem:[#allocation26_spill]] %s1136_s19  ;;  %s1249_s22 = sadd.s32 1, %s1140_s20  }
  0x18   : > { %1577 = sst [smem:[#allocation27_spill]] %s1249_s22  ;;  %s47_s23 = ssub.s32 %s1140_s20, %s1249_s22 }
  0x19   : > { %s50_s24 = sadd.s32 1, %s1136_s19  ;;  %p48_p0 = scmp.eq.s32.totalorder %s47_s23, 0 }
  0x1a   : > { %p57_p1 = scmp.ne.s32.totalorder %s1136_s19, %s1132_s18  ;;  %p58_p2 = scmp.eq.s32.totalorder %s1140_s20, 0 }
  0x1b   : > { %p63_p3 = scmp.ne.s32.totalorder %s1132_s18, %s1128_s17  ;;  %p1570_p5 = scmp.eq.s32.totalorder %s1246_s21, 0 }
  0x1c   : > { %s1259_s25 = scalar_select %p48_p0, %s1136_s19, %s50_s24  }
  0x1d   : > { %p59_p4 = por %p58_p2, %p57_p1  ;;  %s1265_s26 = sld [smem:[#allocation3 + %s1249_s22]] }
  0x1e   : > { %1578 = sst [smem:[#allocation28_spill]] %s1259_s25  ;;  %p1269_p6 = por %p1570_p5, %p63_p3 }
  0x1f   : > { %s1274_s28 = sld [smem:[#allocation4 + %s1249_s22]]  ;;  %p1569_p7 = scmp.lt.s32.totalorder %s1140_s20, 8 }
  0x20   : > { %s1579_s27 = scalar_select %p1269_p6, 1, 0 }
  0x21   : > { %s1278_s29 = sand.u32 1, %s1136_s19   ;;  %s264_s30 = sand.u32 1, %s1140_s20  }
  0x22   : > { %1580 = sst [smem:[#allocation29_spill]] %s1579_s27  ;;  %p1283_p8 = pnand %p1569_p7, %p59_p4 }
  0x23   : > { %s1582_s3 = sld [smem:[#allocation33_spill]]  ;;  %s267_s17 = scalar_lea.vmem [#allocation7], %s1278_s29 }
  0x24   : > { %s274_s23 = sshll.u32 %s267_s17, 4  ;;  %s1294_s25 = scalar_lea.sflag [#allocation8], %s264_s30  ;;  %s275_s23 = int_to_ptr.vmem [resolvable:$true] %s274_s23 }
  0x25   : > { %p864_p10 = pneg %p1283_p8 }
  0x29   : > { %s270_s12 = scalar_lea.hbm %s1582_s3, %s1140_s20  ;;  %s867_s17 = scalar_lea.hbm %s1582_s3, 8 }
  0x2a   : > { %s272_s24 = sshll.u32 %s270_s12, 4  ;;  %s273_s24 = int_to_ptr.hbm [resolvable:$true] %s272_s24 }
  0x2b   : > { %s860_s19 = sshra.s32 %s273_s24, 4  ;;  %s861_s19 = int_to_ptr.hbm [resolvable:$true] %s860_s19 }
  0x2c   : > { %s862_s22 = scalar_lea.hbm %s861_s19, 1  ;;  %p868_p13 = scmp.lt.s32.totalorder %s861_s19, %s1582_s3 }
  0x2d   : > { %p863_p9 = scmp.ne.s32.totalorder %s861_s19, %s862_s22  ;;  %p869_p0 = scmp.lt.s32.totalorder %s867_s17, %s862_s22 }
  0x2f   : > { %p865_p11 = pnand %p864_p10, %p863_p9  ;;  %p870_p1 = por %p869_p0, %p868_p13 }
  0x31   : > { %p866_p12 = pneg %p865_p11 }
  0x33   : > { %p871_p3 = pnand %p870_p1, %p866_p12 }
  0x35   : > { %874 = shalt.err (!%p871_p3)
}
  0x36   : > { %734 = dma.hbm_to_vmem [thread:$0]  (!%p1283_p8), %s273_s24, 16, %s275_s23, %s1294_s25  }
  0x37   : > { %p703_p4 = scmp.ge.s32.totalorder %s1140_s20, 1  ;;  %p359_p9 = scmp.lt.s32.totalorder %s1140_s20, 9 }
  0x38   : > { %s1585_s5 = sld [smem:[#allocation34_spill]]  ;;  %s307_s17 = scalar_lea.vmem [#allocation10], %s1278_s29 }
  0x39   : > { %p1312_p11 = pnand %p703_p4, %p359_p9  ;;  %s314_s12 = sshll.u32 %s307_s17, 4  ;;  %s315_s12 = int_to_ptr.vmem [resolvable:$true] %s314_s12 }
  0x3a   : > { %s1323_s3 = scalar_lea.sflag [#allocation11], %s264_s30 }
  0x3b   : > { %s1583_s10 = scalar_select %p1312_p11, 1, 0 }
  0x3d   : > { %1584 = sst [smem:[#allocation30_spill]] %s1583_s10 }
  0x3e   : > { %s310_s22 = scalar_lea.hbm %s1585_s5, %s1140_s20  ;;  %s897_s8 = scalar_lea.hbm %s1585_s5, 8 }
  0x3f   : > { %s312_s11 = sshll.u32 %s310_s22, 4  ;;  %s313_s11 = int_to_ptr.hbm [resolvable:$true] %s312_s11 }
  0x40   : > { %s890_s27 = sshra.s32 %s313_s11, 4  ;;  %s891_s27 = int_to_ptr.hbm [resolvable:$true] %s890_s27 }
  0x41   : > { %s892_s23 = scalar_lea.hbm %s891_s27, 1  ;;  %p898_p1 = scmp.lt.s32.totalorder %s891_s27, %s1585_s5 }
  0x42   : > { %p893_p12 = scmp.ne.s32.totalorder %s891_s27, %s892_s23  ;;  %p899_p3 = scmp.lt.s32.totalorder %s897_s8, %s892_s23 }
  0x44   : > { %p895_p13 = pnand %p893_p12, %p864_p10  ;;  %p900_p4 = por %p899_p3, %p898_p1 }
  0x46   : > { %p896_p0 = pneg %p895_p13 }
  0x48   : > { %p901_p9 = pnand %p900_p4, %p896_p0 }
  0x4a   : > { %904 = shalt.err (!%p901_p9)
}
  0x4b   : > { %742 = dma.hbm_to_vmem [thread:$0]  (!%p1283_p8), %s313_s11, 16, %s315_s12, %s1323_s3  }
  0x4c   : > { %s1586_s2 = sld [smem:[#allocation32_spill]]  ;;  %s250_s24 = scalar_lea.vmem [#allocation5], %s1278_s29 }
  0x4d   : > { %s257_s10 = sshll.u32 %s250_s24, 4  ;;  %s248_s27 = scalar_lea.sflag [#allocation6], %s1278_s29  ;;  %s258_s10 = int_to_ptr.vmem [resolvable:$true] %s257_s10 }
  0x52   : > { %s253_s18 = scalar_lea.hbm %s1586_s2, %s1140_s20  ;;  %s927_s12 = scalar_lea.hbm %s1586_s2, 8 }
  0x53   : > { %s255_s19 = sshll.u32 %s253_s18, 4  ;;  %s256_s19 = int_to_ptr.hbm [resolvable:$true] %s255_s19 }
  0x54   : > { %s920_s23 = sshra.s32 %s256_s19, 4  ;;  %s921_s23 = int_to_ptr.hbm [resolvable:$true] %s920_s23 }
  0x55   : > { %s922_s8 = scalar_lea.hbm %s921_s23, 1  ;;  %p928_p1 = scmp.lt.s32.totalorder %s921_s23, %s1586_s2 }
  0x56   : > { %p923_p12 = scmp.ne.s32.totalorder %s921_s23, %s922_s8  ;;  %p929_p3 = scmp.lt.s32.totalorder %s927_s12, %s922_s8 }
  0x58   : > { %p925_p13 = pnand %p923_p12, %p864_p10  ;;  %p930_p4 = por %p929_p3, %p928_p1 }
  0x5a   : > { %p926_p0 = pneg %p925_p13 }
  0x5c   : > { %p931_p9 = pnand %p930_p4, %p926_p0 }
  0x5e   : > { %934 = shalt.err (!%p931_p9)
}
  0x5f   : > { %731 = dma.hbm_to_vmem [thread:$0]  (!%p1283_p8), %s256_s19, 16, %s258_s10, %s248_s27  }
  0x60   : > { %s99_s18 = sld [smem:[#allocation3 + %s1140_s20]]  ;;  %s104_s24 = sadd.s32 1, %s1124_s16 }
  0x61   : > { %p111_p12 = scmp.ne.s32.totalorder %s1124_s16, %s1120_s15  ;;  %p117_p13 = scmp.ne.s32.totalorder %s1120_s15, %s1116_s14 }
  0x62   : > { %s283_s23 = sand.u32 1, %s1124_s16  }
  0x63   : > { %p1363_p0 = por %p111_p12, %p58_p2  ;;  %s697_s10 = sshll.u32 %s283_s23, 5 }
  0x64   : > { %p1369_p1 = por %p117_p13, %p1570_p5  ;;  %s285_s22 = scalar_lea.vmem [#allocation9], %s697_s10 }
  0x65   : > { %s714_s27 = scalar_select %p1363_p0, [#allocation3], [#allocation15] }
  0x66   : > { %s101_s14 = ssub.s32 %s99_s18, %s1265_s26  ;;  %s1376_s11 = sshll.u32 %s285_s22, 4 }
  0x67   : > { %1589 = sst [smem:[#allocation31_spill]] %s1376_s11  ;;  %p102_p3 = scmp.eq.s32.totalorder %s101_s14, 0 }
  0x68   : > { %s715_s12 = scalar_select %p1363_p0, %s1140_s20, 0 }
  0x69   : > { %s1383_s30 = scalar_select %p102_p3, %s1124_s16, %s104_s24  }
  0x6a   : > { %s1614_s27 = smov (!%p1569_p7, %s714_s27), [#allocation17]  ;;  %s1616_s12 = smov (!%p1569_p7, %s715_s12), 0 }
  0x6b   : > { %p1393_p4 = pnand %p1569_p7, %p1363_p0  ;;  %s286_s26 = sld [smem:[%s1614_s27 + %s1616_s12]] }
  0x6c   : > { %s327_s10 = scalar_lea.hbm %s1557_s6, %s1140_s20  ;;  %s324_s14 = scalar_lea.vmem [#allocation12], %s1278_s29 }
  0x6d   : > { %s331_s22 = sshll.u32 %s324_s14, 4  ;;  %s329_s11 = sshll.u32 %s327_s10, 4  ;;  %s332_s22 = int_to_ptr.vmem [resolvable:$true] %s331_s22  ;;  %s330_s11 = int_to_ptr.hbm [resolvable:$true] %s329_s11 }
  0x6e   : > { %s950_s24 = sshra.s32 %s330_s11, 4  ;;  %s957_s27 = scalar_lea.hbm %s1557_s6, 8  ;;  %s951_s24 = int_to_ptr.hbm [resolvable:$true] %s950_s24 }
  0x6f   : > { %s952_s2 = scalar_lea.hbm %s951_s24, 1  ;;  %p958_p0 = scmp.lt.s32.totalorder %s951_s24, %s1557_s6 }
  0x70   : > { %p953_p9 = scmp.ne.s32.totalorder %s951_s24, %s952_s2  ;;  %p959_p3 = scmp.lt.s32.totalorder %s957_s27, %s952_s2 }
  0x72   : > { %p955_p12 = pnand %p953_p9, %p864_p10  ;;  %p960_p7 = por %p959_p3, %p958_p0 }
  0x74   : > { %p956_p13 = pneg %p955_p12 }
  0x76   : > { %p961_p5 = pnand %p960_p7, %p956_p13 }
  0x78   : > { %964 = shalt.err (!%p961_p5)
}
  0x79   : > { %745 = dma.hbm_to_vmem [thread:$0]  (!%p1283_p8), %s330_s11, 16, %s332_s22, %s1323_s3  }
  0x7a   : > { %s710_s29 = sshll.u32 %s286_s26, 5  ;;  %p984_p9 = pneg %p1393_p4 }
  0x7b   : > { %s291_s14 = scalar_lea.hbm %s1555_s4, %s710_s29  ;;  %s987_s24 = scalar_lea.hbm %s1555_s4, 128 }
  0x7c   : > { %s292_s5 = sshll.u32 %s291_s14, 4  ;;  %s293_s5 = int_to_ptr.hbm [resolvable:$true] %s292_s5 }
  0x7d   : > { %s980_s8 = sshra.s32 %s293_s5, 4  ;;  %s981_s8 = int_to_ptr.hbm [resolvable:$true] %s980_s8 }
  0x7e   : > { %s982_s12 = scalar_lea.hbm %s981_s8, 32  ;;  %p988_p8 = scmp.lt.s32.totalorder %s981_s8, %s1555_s4 }
  0x7f   : > { %p983_p10 = scmp.ne.s32.totalorder %s981_s8, %s982_s12  ;;  %p989_p12 = scmp.lt.s32.totalorder %s987_s24, %s982_s12 }
  0x81   : > { %p985_p7 = pnand %p984_p9, %p983_p10  ;;  %p990_p13 = por %p989_p12, %p988_p8 }
  0x83   : > { %p986_p5 = pneg %p985_p7 }
  0x85   : > { %p991_p0 = pnand %p990_p13, %p986_p5 }
  0x87   : > { %994 = shalt.err (!%p991_p0)
}
  0x88   : > { %s1144_s26 = smov 128   ;;  %s1591_s22 = sld [smem:[#allocation31_spill]] }
  0x89   : > { %s1145_s27 = smov 8   ;;  %s179_s29 = sld [smem:[#allocation4 + %s1140_s20]] }
  0x8a   : > { %p191_p3 = scmp.ne.s32.totalorder %s1112_s13, %s1108_s1  ;;  %p197_p10 = scmp.ne.s32.totalorder %s1108_s1, %s1104_s0 }
  0x8b   : > { %s338_s23 = sand.u32 1, %s1112_s13   ;;  %p1593_p7 = scmp.eq.s32.totalorder %s1246_s21, 0 }
  0x8c   : > { %p193_p9 = por %p191_p3, %p58_p2  ;;  %s184_s14 = sadd.s32 1, %s1112_s13 }
  0x8d   : > { %p1443_p5 = por %p197_p10, %p1593_p7  ;;  %s700_s8 = sshll.u32 %s338_s23, 5 }
  0x8e   : > { %s1592_s18 = int_to_ptr.vmem [resolvable:$true] %s1591_s22  ;;  %p1595_p12 = scmp.lt.s32.totalorder %s1140_s20, 8 }
  0x8f   : > { %739 = dma.hbm_to_vmem [thread:$0]  (!%p1393_p4), %s293_s5, 512, %s1592_s18, %s1294_s25, %s1144_s26, %s1144_s26, %s1145_s27  }
  0x90   : > { %s181_s17 = ssub.s32 %s179_s29, %s1274_s28  ;;  %p1451_p13 = pnand %p1595_p12, %p193_p9 }
  0x91   : > { %p182_p8 = scmp.eq.s32.totalorder %s181_s17, 0  ;;  %p1597_p4 = pmov %p1595_p12 }
  0x92   : > { %s719_s25 = scalar_select %p193_p9, [#allocation4], [#allocation16] }
  0x93   : > { %s1456_s5 = scalar_select %p182_p8, %s1112_s13, %s184_s14  }
  0x94   : > { %s720_s0 = scalar_select %p193_p9, %s1140_s20, 0 }
  0x95   : > { %s1618_s25 = smov (!%p1597_p4, %s719_s25), [#allocation18]  ;;  %p1598_p2 = pmov %p1597_p4 }
  0x96   : > { %s342_s9 = scalar_lea.vmem [#allocation13], %s700_s8  ;;  %s339_s29 = scalar_lea.sflag [#allocation14], %s338_s23 }
  0x97   : > { %s1620_s0 = smov (!%p1598_p2, %s720_s0), 0  ;;  %s351_s24 = sshll.u32 %s342_s9, 4  ;;  %s352_s24 = int_to_ptr.vmem [resolvable:$true] %s351_s24 }
  0x98   : > { %s343_s2 = sld [smem:[%s1618_s25 + %s1620_s0]]  ;;  %p1014_p3 = pneg %p1451_p13 }
  0x99   : > { %s1017_s25 = scalar_lea.hbm %s1558_s7, 128 }
  0x9e   : > { %s711_s28 = sshll.u32 %s343_s2, 5 }
  0x9f   : > { %s348_s22 = scalar_lea.hbm %s1558_s7, %s711_s28 }
  0xa0   : > { %s349_s18 = sshll.u32 %s348_s22, 4  ;;  %s350_s18 = int_to_ptr.hbm [resolvable:$true] %s349_s18 }
  0xa1   : > { %s1010_s14 = sshra.s32 %s350_s18, 4  ;;  %s1011_s14 = int_to_ptr.hbm [resolvable:$true] %s1010_s14 }
  0xa2   : > { %s1012_s17 = scalar_lea.hbm %s1011_s14, 32  ;;  %p1018_p7 = scmp.lt.s32.totalorder %s1011_s14, %s1558_s7 }
  0xa3   : > { %p1013_p0 = scmp.ne.s32.totalorder %s1011_s14, %s1012_s17  ;;  %p1019_p8 = scmp.lt.s32.totalorder %s1017_s25, %s1012_s17 }
  0xa5   : > { %p1015_p10 = pnand %p1014_p3, %p1013_p0  ;;  %p1020_p12 = por %p1019_p8, %p1018_p7 }
  0xa7   : > { %p1016_p9 = pneg %p1015_p10 }
  0xa9   : > { %p1021_p4 = pnand %p1020_p12, %p1016_p9 }
  0xab   : > { %1024 = shalt.err (!%p1021_p4)
}
  0xac   : > { %750 = dma.hbm_to_vmem [thread:$0]  (!%p1451_p13), %s350_s18, 512, %s352_s24, %s339_s29, %s1144_s26, %s1144_s26, %s1145_s27  }
  0xad   : > { %363 = sbr.rel (%p1312_p11) target bundleno = 465 (0x1d1), region = 44  ;;  %s1600_s9 = sld [smem:[#allocation25_spill]] (!%p1312_p11) }
  0xb3   : > { %s1482_s3 = sand.u32 1, %s1600_s9  }
  0xb4   : > { %s366_s11 = scalar_lea.sflag [#allocation6], %s1482_s3  ;;  %s368_s22 = scalar_lea.vmem [#allocation5], %s1482_s3 }
  0xb5   : > { %1083 = dma.done.wait (%p1269_p6), %s366_s11, 16  }
  0xb6   : > { %1085 = vsyncadd (%p1269_p6), %s366_s11, 4294967280  ;;  %s374_s26 = sand.u32 1, %s1246_s21   ;;  %s377_s12 = scalar_lea.vmem [#allocation7], %s1482_s3 }
  0xb7   : > { %s375_s27 = scalar_lea.sflag [#allocation8], %s374_s26 }
  0xb8   : > { %1087 = dma.done.wait (%p1269_p6), %s375_s27, 16  }
  0xb9   : > { %1089 = vsyncadd (%p1269_p6), %s375_s27, 4294967280  ;;  %s385_s24 = sand.u32 1, %s1120_s15  }
  0xba   : > { %s704_s18 = sshll.u32 %s385_s24, 5 }
  0xbb   : > { %s387_s29 = scalar_lea.vmem [#allocation9], %s704_s18 }
  0xbc   : > { %1091 = dma.done.wait (%p1369_p1), %s375_s27, 512  }
  0xbd   : > { %1093 = vsyncadd (%p1369_p1), %s375_s27, 4294966784  ;;  %s394_s14 = scalar_lea.sflag [#allocation11], %s374_s26  ;;  %s396_s17 = scalar_lea.vmem [#allocation10], %s1482_s3 }
  0xbe   : > { %1095 = dma.done.wait (%p1269_p6), %s394_s14, 32  }
  0xbf   : > { %1097 = vsyncadd (%p1269_p6), %s394_s14, 4294967264  ;;  %s411_s20 = sand.u32 1, %s1108_s1   ;;  %s405_s25 = scalar_lea.vmem [#allocation12], %s1482_s3 }
  0xc0   : > { %s705_s8 = sshll.u32 %s411_s20, 5  ;;  %s412_s0 = scalar_lea.sflag [#allocation14], %s411_s20 }
  0xc1   : > { %s415_s2 = scalar_lea.vmem [#allocation13], %s705_s8 }
  0xc2   : > { %1099 = dma.done.wait (%p1443_p5), %s412_s0, 512  }
  0xc3   : > { %1101 = vsyncadd (%p1443_p5), %s412_s0, 4294966784  ;;  %v473_v0 = vld [vmem:[%s387_s29 + $0x18] sm:$0xff]  ;;  %v472_v1 = vld [vmem:[%s387_s29 + $0x10] sm:$0xff]  ;;  %vm475_vm0 = vcmask 261120   ;;  %vm500_vm1 = vcmask 253952   ;;  %p466_p6 = scmp.lt.s32.totalorder %s1246_s21, 7 }
  0xc4   : > { %491 = vmatpush.msra.mxu0 %v473_v0  ;;  %v508_v2 = vld [vmem:[%s415_s2 + $0x18] sm:$0xff]  ;;  %v471_v3 = vld [vmem:[%s387_s29 + $0x8] sm:$0xff]  ;;  %v507_v4 = vld [vmem:[%s415_s2 + $0x10] sm:$0xff]  ;;  %s1602_s23 = sld [smem:[#allocation35_spill]]  ;;  %vm540_vm2 = vcmask 0  }
  0xc5   : > { %525 = vmatpush.msra.mxu1 %v508_v2  ;;  %v506_v5 = vld [vmem:[%s415_s2 + $0x8] sm:$0xff]  ;;  %v470_v6 = vld [vmem:[%s387_s29] sm:$0xff]  ;;  %v469_v7 = vld [vmem:[%s368_s22] sm:$0x1]  ;;  %s1622_s21 = smov (!%p466_p6, %s1246_s21), 7 }
  0xc6   : > { %492 = vmatpush.msra.mxu0 %v472_v1  ;;  %v505_v8 = vld [vmem:[%s415_s2] sm:$0xff]  ;;  %v504_v9 = vld [vmem:[%s396_s17] sm:$0x1] }
  0xc7   : > { %526 = vmatpush.msra.mxu1 %v507_v4  ;;  %v474_v10 = vld [vmem:[%s377_s12] sm:$0x1] }
  0xc8   : > { %493 = vmatpush.msra.mxu0 %v471_v3  ;;  %v509_v12 = vld [vmem:[%s405_s25] sm:$0x1] }
  0xc9   : > { %527 = vmatpush.msra.mxu1 %v506_v5 }
  0xca   : > { %494 = vmatpush.msra.mxu0 %v470_v6  ;;  %s468_s9 = scalar_lea.vmem %s1602_s23, %s1622_s21 }
  0xcb   : > { %706 = vmatmul.msk.f32.vlgmr.msra.gmra.mxu0 %vm475_vm0, %v469_v7  ;;  %528 = vmatpush.msra.mxu1 %v505_v8 }
  0xcc   : > { %707 = vmatmul.msk.f32.vlgmr.msra.gmra.mxu1 %vm475_vm0, %v504_v9 }
 0x148   : > { %v496_v11 = vpop.f32.mrf.mxu0 }
 0x149   : > { %v497_v13 = vadd.f32 %v496_v11, %v474_v10  ;;  %v530_v14 = vpop.f32.mrf.mxu1 }
 0x14a   : > { %v531_v16 = vadd.f32 %v530_v14, %v509_v12 }
 0x14b   : > { %v499_v15 = vand.u32 2147483647, %v497_v13 }
 0x14c   : > { %v533_v18 = vand.u32 2147483647, %v531_v16 }
 0x14d   : > { %v501_v17 = vsel %vm500_vm1, %v499_v15, 0.0 }
 0x14e   : > { %502 = vadd.xlane.f32.xlu0 %v501_v17  ;;  %v534_v19 = vsel %vm500_vm1, %v533_v18, 0.0 }
 0x156   : > { %535 = vadd.xlane.f32.xlu0 %v534_v19 }
 0x1c1   : > { %v503_v20 = vpop.xlane.xlu0 %502 }
 0x1c9   : > { %v536_v21 = vpop.xlane.xlu0 %535 }
 0x1ca   : > { %v537_v22 = vsub.f32 %v503_v20, %v536_v21 }
 0x1cc   : > { %v538_v23 = vadd.f32 1.0, %v537_v22 }
 0x1ce   : > { %v539_v24 = vmax.f32 %v538_v23, 0.0 }
 0x1d0   : > { %541 = vst.msk [vmem:[%s468_s9] sm:$0x1] %vm540_vm2, %v539_v24 }
 0x1d1 PF: > { %s1603_s20 = sld [smem:[#allocation27_spill]]  ;;  %s1607_s0 = smov %s1108_s1 }
 0x1d2   : > { %s1604_s17 = sld [smem:[#allocation25_spill]]  ;;  %s1608_s1 = smov %s1112_s13 }
 0x1d3   : > { %s1605_s18 = sld [smem:[#allocation26_spill]]  ;;  %s1609_s13 = smov %s1456_s5 }
 0x1d4   : > { %s1606_s19 = sld [smem:[#allocation28_spill]]  ;;  %s1610_s14 = smov %s1120_s15 }
 0x1d5   : > { %s1611_s15 = smov %s1124_s16  ;;  %s1612_s16 = smov %s1383_s30 }
 0x1d7   : > { %p40_p11 = scmp.ge.s32.totalorder %s1603_s20, 10  }
 0x1d9   :  { %42 = sbr.rel (!%p40_p11) target bundleno = 22 (0x16), region = 145 }
 0x1de   :  { %559 = vsyncpa [#allocation6], 1 }
 0x1df   :  { %561 = vsyncpa [#allocation6 + $0x1], 1 }
 0x1e0   :  { %562 = vsyncpa [#allocation8], 1 }
 0x1e1   :  { %564 = vsyncpa [#allocation8 + $0x1], 1 }
 0x1e2   :  { %565 = vsyncpa [#allocation11], 1 }
 0x1e3   :  { %567 = vsyncpa [#allocation11 + $0x1], 1 }
 0x1e4   :  { %568 = vsyncpa [#allocation14], 1 }
 0x1e5   :  { %570 = vsyncpa [#allocation14 + $0x1], 1 }

</bundles_post_ra>
